<compile_context>
chip_gen: v7x
topology: tpu7x:2x2x1
jax: 0.10.0
libtpu: 0.0.40
codegen_flags: <defaults>
</compile_context>

<pallas_src>
import functools

import jax
import jax.numpy as jnp
from jax.experimental import pallas as pl
from jax.experimental.pallas import tpu as pltpu


# --------------------------------------------------------------------------
# Fused kernel: GRU cell (grid step 0 only) + streamed vocab projection.
# --------------------------------------------------------------------------
def decoder_step_kernel(x_ref, h_ref, wgx_ref, wgh_ref, wh_ref,
                        wout_ref, bout_ref,          # inputs
                        out_ref, ht_ref,             # outputs
                        ht_bf16_scr):                # scratch
    H = h_ref.shape[1]

    @pl.when(pl.program_id(0) == 0)
    def _():
        h = h_ref[...]                                           # (B, H) f32

        # x-side pre-activations: one bf16 MXU call -> (B, 3H) f32 accum.
        pre_x = jnp.dot(x_ref[...], wgx_ref[...],
                        preferred_element_type=jnp.float32)
        # h-side pre-activations: keep h in f32 (cast weights, not state).
        pre_h = jnp.dot(h, wgh_ref[...].astype(jnp.float32),
                        preferred_element_type=jnp.float32)      # (B, 2H)

        # Gate slices are lane-aligned when H is a multiple of 128.
        z = jax.nn.sigmoid(pre_x[:, :H] + pre_h[:, :H])
        r = jax.nn.sigmoid(pre_x[:, H:2 * H] + pre_h[:, H:])
        h_tilde = jnp.tanh(
            pre_x[:, 2 * H:]
            + jnp.dot(r * h, wh_ref[...].astype(jnp.float32),
                      preferred_element_type=jnp.float32))

        h_t = z * h + (1.0 - z) * h_tilde
        ht_ref[...] = h_t                                # f32 recurrent state
        ht_bf16_scr[...] = h_t.astype(ht_bf16_scr.dtype) # projection operand

    # Per-vocab-tile projection: (B, H) bf16 @ (H, tn) bf16, f32 accumulate.
    logits = jnp.dot(ht_bf16_scr[...], wout_ref[...],
                     preferred_element_type=jnp.float32)
    out_ref[...] = logits + bout_ref[...]


# --------------------------------------------------------------------------
# Wrapper
# --------------------------------------------------------------------------
def rnn_decoder_forward(token_idx, h_old, params, *, vocab_tile=8192):
    """One decode step: (token_idx (B,), h_old (B,H)) -> (logits (B,V), h_t (B,H))."""
    emb = params["embedding"]     # (V, E)     bf16
    wgx = params["w_gates_x"]     # (E, 3H)    bf16  [Wzx | Wrx | Wx]
    wgh = params["w_gates_h"]     # (H, 2H)    bf16  [Wzh | Wrh]
    wh = params["wh"]             # (H, H)     bf16
    wout = params["wout"]         # (H, V)     bf16
    bout = params["bout"]         # (1, V)     f32

    B = token_idx.shape[0]
    H = h_old.shape[1]
    E = emb.shape[1]
    V = wout.shape[1]

    # Embedding gather stays in plain JAX (glue).
    # TODO(synk): for multi-step autoregressive decode, move the timestep loop
    # inside the kernel (PrefetchScalarGridSpec token ids + row-gather DMA of
    # the embedding table) so weights are DMA'd once per sequence, not per step.
    x = emb[token_idx]

    # Pad batch to one f32 sublane group (8 rows); sliced off at the end.
    B_pad = max(8, -(-B // 8) * 8)
    pad = B_pad - B
    h_f32 = h_old.astype(jnp.float32)
    if pad:
        x = jnp.pad(x, ((0, pad), (0, 0)))
        h_f32 = jnp.pad(h_f32, ((0, pad), (0, 0)))

    tn = V if V <= vocab_tile else vocab_tile     # multiple of 128 when tiling
    grid = (pl.cdiv(V, tn),)

    resident = lambda shape: pl.BlockSpec(shape, lambda j: (0,) * len(shape))

    out, h_t = pl.pallas_call(
        decoder_step_kernel,
        out_shape=(jax.ShapeDtypeStruct((B_pad, V), jnp.float32),
                   jax.ShapeDtypeStruct((B_pad, H), jnp.float32)),
        grid=grid,
        in_specs=[resident((B_pad, E)),                     # x        (once)
                  resident((B_pad, H)),                     # h        (once)
                  resident((E, 3 * H)),                     # Wg_x     (once)
                  resident((H, 2 * H)),                     # Wg_h     (once)
                  resident((H, H)),                         # Wh       (once)
                  pl.BlockSpec((H, tn), lambda j: (0, j)),  # Wout  streamed
                  pl.BlockSpec((1, tn), lambda j: (0, j))], # bout  streamed
        out_specs=(pl.BlockSpec((B_pad, tn), lambda j: (0, j)),  # lane-dense
                   resident((B_pad, H))),                        # h_t resident
        scratch_shapes=[pltpu.VMEM((B_pad, H), wout.dtype)],     # bf16 h_t
        compiler_params=pltpu.CompilerParams(
            # h_t out_spec is constant across the vocab axis -> "arbitrary".
            dimension_semantics=("arbitrary",),
            vmem_limit_bytes=48 * 1024 * 1024),
    )(x, h_f32, wgx, wgh, wh, wout, bout)

    return out[:B], h_t[:B]


# --------------------------------------------------------------------------
# Parameters (PyTorch-layout weights, then fused + cast for the kernel)
# --------------------------------------------------------------------------
def init_raw_params(key, vocab_size, embedding_dim, hidden_size):
    ks = jax.random.split(key, 9)
    scale = 0.1
    n = lambda k, s: scale * jax.random.normal(k, s, jnp.float32)
    # Linear weights stored (in_features, out_features) == PyTorch W.T
    return {
        "embedding": n(ks[0], (vocab_size, embedding_dim)),
        "wzx": n(ks[1], (embedding_dim, hidden_size)),
        "wzh": n(ks[2], (hidden_size, hidden_size)),
        "wrx": n(ks[3], (embedding_dim, hidden_size)),
        "wrh": n(ks[4], (hidden_size, hidden_size)),
        "wx":  n(ks[5], (embedding_dim, hidden_size)),
        "wh":  n(ks[6], (hidden_size, hidden_size)),
        "wout": n(ks[7], (hidden_size, vocab_size)),
        "bout": n(ks[8], (1, vocab_size)),
    }


def fuse_params(raw, param_dtype=jnp.bfloat16):
    c = {k: v.astype(param_dtype) for k, v in raw.items() if k != "bout"}
    return {
        "embedding": c["embedding"],
        "w_gates_x": jnp.concatenate([c["wzx"], c["wrx"], c["wx"]], axis=1),
        "w_gates_h": jnp.concatenate([c["wzh"], c["wrh"]], axis=1),
        "wh": c["wh"],
        "wout": c["wout"],
        "bout": raw["bout"].astype(jnp.float32),
    }


def reference_forward(token_idx, h_old, raw, param_dtype=jnp.bfloat16):
    """f32 reference using the same bf16-rounded weights as the kernel."""
    f32 = lambda a: a.astype(param_dtype).astype(jnp.float32)
    x = f32(raw["embedding"])[token_idx]
    h = h_old.astype(jnp.float32)
    z = jax.nn.sigmoid(x @ f32(raw["wzx"]) + h @ f32(raw["wzh"]))
    r = jax.nn.sigmoid(x @ f32(raw["wrx"]) + h @ f32(raw["wrh"]))
    h_tilde = jnp.tanh(x @ f32(raw["wx"]) + (r * h) @ f32(raw["wh"]))
    h_t = z * h + (1.0 - z) * h_tilde
    out = h_t @ f32(raw["wout"]) + raw["bout"].astype(jnp.float32)
    return out, h_t


if __name__ == "__main__":
    vocab_size, embedding_dim, hidden_size, batch = 512, 64, 128, 4

    key = jax.random.PRNGKey(0)
    kp, kt, kh = jax.random.split(key, 3)
    raw = init_raw_params(kp, vocab_size, embedding_dim, hidden_size)
    params = fuse_params(raw, jnp.bfloat16)

    token_idx = jax.random.randint(kt, (batch,), 0, vocab_size, dtype=jnp.int32)
    h_old = jax.random.normal(kh, (batch, hidden_size), jnp.float32)

    out_ref, h_ref = reference_forward(token_idx, h_old, raw)

    # Default (production) tile: at this small V the whole vocab is one block.
    fwd = jax.jit(rnn_decoder_forward)
    out, h_t = fwd(token_idx, h_old, params)
    jax.block_until_ready((out, h_t))
    assert jnp.allclose(h_t, h_ref, atol=2e-2, rtol=2e-2), \
        float(jnp.max(jnp.abs(h_t - h_ref)))
    assert jnp.allclose(out, out_ref, atol=2e-2, rtol=2e-2), \
        float(jnp.max(jnp.abs(out - out_ref)))

    # Small tile: correctness test of the vocab grid + resident h_t out_spec.
    fwd_tiled = jax.jit(functools.partial(rnn_decoder_forward, vocab_tile=128))
    out2, h_t2 = fwd_tiled(token_idx, h_old, params)
    jax.block_until_ready((out2, h_t2))
    assert jnp.allclose(h_t2, h_ref, atol=2e-2, rtol=2e-2), \
        float(jnp.max(jnp.abs(h_t2 - h_ref)))
    assert jnp.allclose(out2, out_ref, atol=2e-2, rtol=2e-2), \
        float(jnp.max(jnp.abs(out2 - out_ref)))

    print("KERNEL_OK")
</pallas_src>

<mosaic_0001>
module attributes {stable_mosaic.version = 11 : i64} {
  func.func @decoder_step_kernel(%arg0: i32, %arg1: memref<8x64xbf16, #tpu.memory_space<vmem>>, %arg2: memref<8x128xf32, #tpu.memory_space<vmem>>, %arg3: memref<64x384xbf16, #tpu.memory_space<vmem>>, %arg4: memref<128x256xbf16, #tpu.memory_space<vmem>>, %arg5: memref<128x128xbf16, #tpu.memory_space<vmem>>, %arg6: memref<128x512xbf16, #tpu.memory_space<vmem>>, %arg7: memref<1x512xf32, #tpu.memory_space<vmem>>, %arg8: memref<8x512xf32, #tpu.memory_space<vmem>>, %arg9: memref<8x128xf32, #tpu.memory_space<vmem>>, %arg10: memref<8x128xbf16, #tpu.memory_space<vmem>>) attributes {dimension_semantics = [#tpu.dimension_semantics<arbitrary>], iteration_bounds = array<i64: 1>, scalar_prefetch = 0 : i64, scratch_operands = 1 : i64, tpu.core_type = #tpu.core_type<tc>, window_params = [{pipeline_mode = #tpu.pipeline_mode<synchronous>, transform_indices = @transform_0, window_bounds = array<i64: 8, 64>}, {pipeline_mode = #tpu.pipeline_mode<synchronous>, transform_indices = @transform_1, window_bounds = array<i64: 8, 128>}, {pipeline_mode = #tpu.pipeline_mode<synchronous>, transform_indices = @transform_2, window_bounds = array<i64: 64, 384>}, {pipeline_mode = #tpu.pipeline_mode<synchronous>, transform_indices = @transform_3, window_bounds = array<i64: 128, 256>}, {pipeline_mode = #tpu.pipeline_mode<synchronous>, transform_indices = @transform_4, window_bounds = array<i64: 128, 128>}, {transform_indices = @transform_5, window_bounds = array<i64: 128, 512>}, {transform_indices = @transform_6, window_bounds = array<i64: 1, 512>}, {transform_indices = @transform_7, window_bounds = array<i64: 8, 512>}, {pipeline_mode = #tpu.pipeline_mode<synchronous>, transform_indices = @transform_8, window_bounds = array<i64: 8, 128>}]} {
    %c0_i32 = arith.constant 0 : i32
    %0 = arith.cmpi eq, %arg0, %c0_i32 : i32
    %1 = arith.extui %0 : i1 to i32
    %c0_i32_0 = arith.constant 0 : i32
    %2 = arith.cmpi ne, %1, %c0_i32_0 : i32
    scf.if %2 {
      %c0_8 = arith.constant 0 : index
      %c0_9 = arith.constant 0 : index
      %10 = vector.load %arg2[%c0_8, %c0_9] : memref<8x128xf32, #tpu.memory_space<vmem>>, vector<8x128xf32>
      %c0_10 = arith.constant 0 : index
      %c0_11 = arith.constant 0 : index
      %11 = vector.load %arg1[%c0_10, %c0_11] : memref<8x64xbf16, #tpu.memory_space<vmem>>, vector<8x64xbf16>
      %c0_12 = arith.constant 0 : index
      %c0_13 = arith.constant 0 : index
      %12 = vector.load %arg3[%c0_12, %c0_13] : memref<64x384xbf16, #tpu.memory_space<vmem>>, vector<64x384xbf16>
      %cst_14 = arith.constant dense<0.000000e+00> : vector<8x384xf32>
      %13 = tpu.matmul %11, %12, %cst_14 {dimension_numbers = #tpu.dot_dimension_numbers<[1], [0], [0], [1], [0, 0, 1, 1], [], []>} : vector<8x64xbf16>, vector<64x384xbf16>, vector<8x384xf32> -> vector<8x384xf32>
      %c0_15 = arith.constant 0 : index
      %c0_16 = arith.constant 0 : index
      %14 = vector.load %arg4[%c0_15, %c0_16] : memref<128x256xbf16, #tpu.memory_space<vmem>>, vector<128x256xbf16>
      %15 = arith.extf %14 : vector<128x256xbf16> to vector<128x256xf32>
      %cst_17 = arith.constant dense<0.000000e+00> : vector<8x256xf32>
      %16 = tpu.matmul %10, %15, %cst_17 {dimension_numbers = #tpu.dot_dimension_numbers<[1], [0], [0], [1], [0, 0, 1, 1], [], []>} : vector<8x128xf32>, vector<128x256xf32>, vector<8x256xf32> -> vector<8x256xf32>
      %17 = vector.extract_strided_slice %13 {offsets = [0, 0], sizes = [8, 128], strides = [1, 1]} : vector<8x384xf32> to vector<8x128xf32>
      %18 = vector.extract_strided_slice %16 {offsets = [0, 0], sizes = [8, 128], strides = [1, 1]} : vector<8x256xf32> to vector<8x128xf32>
      %19 = arith.addf %17, %18 : vector<8x128xf32>
      %20 = arith.negf %19 : vector<8x128xf32>
      %21 = math.exp %20 : vector<8x128xf32>
      %cst_18 = arith.constant 1.000000e+00 : f32
      %22 = vector.broadcast %cst_18 : f32 to vector<8x128xf32>
      %23 = arith.addf %22, %21 : vector<8x128xf32>
      %24 = arith.divf %22, %23 : vector<8x128xf32>
      %25 = vector.extract_strided_slice %13 {offsets = [0, 128], sizes = [8, 128], strides = [1, 1]} : vector<8x384xf32> to vector<8x128xf32>
      %26 = vector.extract_strided_slice %16 {offsets = [0, 128], sizes = [8, 128], strides = [1, 1]} : vector<8x256xf32> to vector<8x128xf32>
      %27 = arith.addf %25, %26 : vector<8x128xf32>
      %28 = arith.negf %27 : vector<8x128xf32>
      %29 = math.exp %28 : vector<8x128xf32>
      %cst_19 = arith.constant 1.000000e+00 : f32
      %30 = vector.broadcast %cst_19 : f32 to vector<8x128xf32>
      %31 = arith.addf %30, %29 : vector<8x128xf32>
      %32 = arith.divf %30, %31 : vector<8x128xf32>
      %33 = vector.extract_strided_slice %13 {offsets = [0, 256], sizes = [8, 128], strides = [1, 1]} : vector<8x384xf32> to vector<8x128xf32>
      %34 = arith.mulf %32, %10 : vector<8x128xf32>
      %c0_20 = arith.constant 0 : index
      %c0_21 = arith.constant 0 : index
      %35 = vector.load %arg5[%c0_20, %c0_21] : memref<128x128xbf16, #tpu.memory_space<vmem>>, vector<128x128xbf16>
      %36 = arith.extf %35 : vector<128x128xbf16> to vector<128x128xf32>
      %cst_22 = arith.constant dense<0.000000e+00> : vector<8x128xf32>
      %37 = tpu.matmul %34, %36, %cst_22 {dimension_numbers = #tpu.dot_dimension_numbers<[1], [0], [0], [1], [0, 0, 1, 1], [], []>} : vector<8x128xf32>, vector<128x128xf32>, vector<8x128xf32> -> vector<8x128xf32>
      %38 = arith.addf %33, %37 : vector<8x128xf32>
      %39 = math.tanh %38 : vector<8x128xf32>
      %40 = arith.mulf %24, %10 : vector<8x128xf32>
      %cst_23 = arith.constant 1.000000e+00 : f32
      %41 = vector.broadcast %cst_23 : f32 to vector<8x128xf32>
      %42 = arith.subf %41, %24 : vector<8x128xf32>
      %43 = arith.mulf %42, %39 : vector<8x128xf32>
      %44 = arith.addf %40, %43 : vector<8x128xf32>
      %c0_24 = arith.constant 0 : index
      %c0_25 = arith.constant 0 : index
      %45 = vector.load %arg9[%c0_24, %c0_25] : memref<8x128xf32, #tpu.memory_space<vmem>>, vector<8x128xf32>
      tpu.vector_store %arg9[%c0_24, %c0_25], %44 {strides = array<i32>} : memref<8x128xf32, #tpu.memory_space<vmem>>, vector<8x128xf32>,
      %46 = arith.truncf %44 : vector<8x128xf32> to vector<8x128xbf16>
      %c0_26 = arith.constant 0 : index
      %c0_27 = arith.constant 0 : index
      %47 = vector.load %arg10[%c0_26, %c0_27] : memref<8x128xbf16, #tpu.memory_space<vmem>>, vector<8x128xbf16>
      tpu.vector_store %arg10[%c0_26, %c0_27], %46 {strides = array<i32>} : memref<8x128xbf16, #tpu.memory_space<vmem>>, vector<8x128xbf16>,
    } else {
    }
    %c0 = arith.constant 0 : index
    %c0_1 = arith.constant 0 : index
    %3 = vector.load %arg10[%c0, %c0_1] : memref<8x128xbf16, #tpu.memory_space<vmem>>, vector<8x128xbf16>
    %c0_2 = arith.constant 0 : index
    %c0_3 = arith.constant 0 : index
    %4 = vector.load %arg6[%c0_2, %c0_3] : memref<128x512xbf16, #tpu.memory_space<vmem>>, vector<128x512xbf16>
    %cst = arith.constant dense<0.000000e+00> : vector<8x512xf32>
    %5 = tpu.matmul %3, %4, %cst {dimension_numbers = #tpu.dot_dimension_numbers<[1], [0], [0], [1], [0, 0, 1, 1], [], []>} : vector<8x128xbf16>, vector<128x512xbf16>, vector<8x512xf32> -> vector<8x512xf32>
    %c0_4 = arith.constant 0 : index
    %c0_5 = arith.constant 0 : index
    %6 = vector.load %arg7[%c0_4, %c0_5] : memref<1x512xf32, #tpu.memory_space<vmem>>, vector<1x512xf32>
    %7 = vector.broadcast %6 : vector<1x512xf32> to vector<8x512xf32>
    %8 = arith.addf %5, %7 : vector<8x512xf32>
    %c0_6 = arith.constant 0 : index
    %c0_7 = arith.constant 0 : index
    %9 = vector.load %arg8[%c0_6, %c0_7] : memref<8x512xf32, #tpu.memory_space<vmem>>, vector<8x512xf32>
    tpu.vector_store %arg8[%c0_6, %c0_7], %8 {strides = array<i32>} : memref<8x512xf32, #tpu.memory_space<vmem>>, vector<8x512xf32>,
    return
  }
  func.func @transform_0(%arg0: i32) -> (i32, i32) {
    %c0_i32 = arith.constant 0 : i32
    %c0_i32_0 = arith.constant 0 : i32
    %c0_i32_1 = arith.constant 0 : i32
    return %c0_i32, %c0_i32_0 : i32, i32
  }
  func.func @transform_1(%arg0: i32) -> (i32, i32) {
    %c0_i32 = arith.constant 0 : i32
    %c0_i32_0 = arith.constant 0 : i32
    %c0_i32_1 = arith.constant 0 : i32
    return %c0_i32, %c0_i32_0 : i32, i32
  }
  func.func @transform_2(%arg0: i32) -> (i32, i32) {
    %c0_i32 = arith.constant 0 : i32
    %c0_i32_0 = arith.constant 0 : i32
    %c0_i32_1 = arith.constant 0 : i32
    return %c0_i32, %c0_i32_0 : i32, i32
  }
  func.func @transform_3(%arg0: i32) -> (i32, i32) {
    %c0_i32 = arith.constant 0 : i32
    %c0_i32_0 = arith.constant 0 : i32
    %c0_i32_1 = arith.constant 0 : i32
    return %c0_i32, %c0_i32_0 : i32, i32
  }
  func.func @transform_4(%arg0: i32) -> (i32, i32) {
    %c0_i32 = arith.constant 0 : i32
    %c0_i32_0 = arith.constant 0 : i32
    %c0_i32_1 = arith.constant 0 : i32
    return %c0_i32, %c0_i32_0 : i32, i32
  }
  func.func @transform_5(%arg0: i32) -> (i32, i32) {
    %c0_i32 = arith.constant 0 : i32
    %c0_i32_0 = arith.constant 0 : i32
    return %c0_i32, %arg0 : i32, i32
  }
  func.func @transform_6(%arg0: i32) -> (i32, i32) {
    %c0_i32 = arith.constant 0 : i32
    %c0_i32_0 = arith.constant 0 : i32
    return %c0_i32, %arg0 : i32, i32
  }
  func.func @transform_7(%arg0: i32) -> (i32, i32) {
    %c0_i32 = arith.constant 0 : i32
    %c0_i32_0 = arith.constant 0 : i32
    return %c0_i32, %arg0 : i32, i32
  }
  func.func @transform_8(%arg0: i32) -> (i32, i32) {
    %c0_i32 = arith.constant 0 : i32
    %c0_i32_0 = arith.constant 0 : i32
    %c0_i32_1 = arith.constant 0 : i32
    return %c0_i32, %c0_i32_0 : i32, i32
  }
}

</mosaic_0001>

<bundles_post_ra>
// kernel: rnn_decoder_forward.1
= control target key start
LH: loop header
LB: loop body
LE: loop exit
PB: predicated region body
PF: predicated region fallthrough
CT: control target
= control target key end

     0   :  { %14 = vsyncpa [#allocation4], 0  ;;  %s1438_s0 = inlined_call_operand.vmem [shape: bf16[8,64], index: 0, kind: input, shape index: {}]   ;;  %s1439_s1 = inlined_call_operand.vmem [shape: f32[8,128], index: 1, kind: input, shape index: {}]   ;;  %s1440_s2 = inlined_call_operand.hbm [shape: bf16[64,384], index: 2, kind: input, shape index: {}]   ;;  %s1441_s3 = inlined_call_operand.vmem [shape: bf16[128,256], index: 3, kind: input, shape index: {}]   ;;  %s1442_s4 = inlined_call_operand.hbm [shape: bf16[128,128], index: 4, kind: input, shape index: {}]   ;;  %s1443_s5 = inlined_call_operand.vmem [shape: bf16[128,512], index: 5, kind: input, shape index: {}]   ;;  %s1444_s6 = inlined_call_operand.vmem [shape: f32[1,512], index: 6, kind: input, shape index: {}]   ;;  %s1445_s7 = inlined_call_operand.vmem [shape: f32[8,512], index: 7, kind: output, shape index: {0}]   ;;  %s1446_s8 = inlined_call_operand.vmem [shape: f32[8,128], index: 8, kind: output, shape index: {1}]  }
   0x1   :  { %15 = vsyncpa [#allocation6], 0  ;;  %s1168_s27 = smov [#allocation3]   ;;  %s1120_s9 = scalar_lea.hbm %s1440_s2, 1536 }
   0x2   :  { %s25_s28 = sshll.u32 %s1168_s27, 4  ;;  %p1121_p0 = scmp.ne.s32.totalorder %s1440_s2, %s1120_s9  ;;  %s26_s28 = int_to_ptr.vmem [resolvable:$true] %s25_s28 }
   0x3   :  { %p1124_p1 = scmp.lt.u32.totalorder %s1120_s9, %s1440_s2 }
   0x5   :  { %p1126_p2 = pnand %p1124_p1, %p1121_p0 }
   0x7   :  { %1129 = shalt.err (!%p1126_p2)
}
   0x8   :  { %s1130_s14 = scalar_lea.vmem %s26_s28, 1536  ;;  %p1135_p4 = scmp.lt.s32.totalorder %s26_s28, %s26_s28 }
   0x9   :  { %p1131_p3 = scmp.ne.s32.totalorder %s26_s28, %s1130_s14  ;;  %p1136_p5 = scmp.lt.s32.totalorder %s1130_s14, %s1130_s14 }
   0xb   :  { %p1137_p6 = por %p1136_p5, %p1135_p4 }
   0xd   :  { %p1138_p7 = pnand %p1137_p6, %p1131_p3 }
   0xf   :  { %1141 = shalt.err (!%p1138_p7)
}
  0x10   :  { %s1169_s15 = smov 192   ;;  %s1170_s16 = smov 12  }
  0x11   :  { %31 = dma.hbm_to_vmem [thread:$0]  %s1440_s2, 1536, %s26_s28, [#allocation4], %s1169_s15, %s1169_s15, %s1170_s16  }
  0x12   :  { %s1171_s19 = smov [#allocation5]   ;;  %s1142_s23 = scalar_lea.hbm %s1442_s4, 1024 }
  0x13   :  { %s39_s20 = sshll.u32 %s1171_s19, 4  ;;  %p1143_p8 = scmp.ne.s32.totalorder %s1442_s4, %s1142_s23  ;;  %s40_s20 = int_to_ptr.vmem [resolvable:$true] %s39_s20 }
  0x14   :  { %p1146_p9 = scmp.lt.u32.totalorder %s1142_s23, %s1442_s4 }
  0x16   :  { %p1148_p10 = pnand %p1146_p9, %p1143_p8 }
  0x18   :  { %1151 = shalt.err (!%p1148_p10)
}
  0x19   :  { %s1152_s29 = scalar_lea.vmem %s40_s20, 1024  ;;  %p1157_p12 = scmp.lt.s32.totalorder %s40_s20, %s40_s20 }
  0x1a   :  { %p1153_p11 = scmp.ne.s32.totalorder %s40_s20, %s1152_s29  ;;  %p1158_p13 = scmp.lt.s32.totalorder %s1152_s29, %s1152_s29 }
  0x1c   :  { %p1159_p0 = por %p1158_p13, %p1157_p12 }
  0x1e   :  { %p1160_p1 = pnand %p1159_p0, %p1153_p11 }
  0x20   :  { %1163 = shalt.err (!%p1160_p1)
}
  0x21   :  { %s1172_s2 = smov 64   ;;  %s1173_s28 = smov 4  }
  0x22   :  { %45 = dma.hbm_to_vmem [thread:$0]  %s1442_s4, 1024, %s40_s20, [#allocation6], %s1172_s2, %s1172_s2, %s1173_s28  }
  0x23   :  { %1164 = dma.done.wait [#allocation4], 1536  }
  0x24   :  { %1165 = vsyncadd [#allocation4], 4294965760 }
  0x25   :  { %1166 = dma.done.wait [#allocation6], 1024  }
  0x26   :  { %1167 = vsyncadd [#allocation6], 4294966272  ;;  %v1174_v0 = vmov 0   ;;  %v1175_v1 = vmov 0.0   ;;  %v1022_v2 = vld [vmem:[#allocation3 + $0x4] ss:$12 sps:$4 sm:$0xff]  }
  0x27   :  { %179 = vmatprep.mubr.bf16.mxu0 %v1174_v0  ;;  %893 = vmatprep.subr.bf16.mxu1 %v1175_v1  ;;  %v1024_v3 = vld [vmem:[#allocation3] ss:$12 sps:$4 sm:$0xff]   ;;  %v1025_v4 = vld [vmem:[#allocation3 + $0x1c] ss:$12 sps:$4 sm:$0xff]   ;;  %v1027_v5 = vld [vmem:[#allocation3 + $0x18] ss:$12 sps:$4 sm:$0xff]  }
  0x28   :  { %147 = vmatprep.subr.bf16.mxu0 %v1022_v2  ;;  %v1028_v6 = vld [vmem:[#allocation3 + $0x34] ss:$12 sps:$4 sm:$0xff]   ;;  %v1030_v7 = vld [vmem:[#allocation3 + $0x30] ss:$12 sps:$4 sm:$0xff]   ;;  %v1031_v8 = vld [vmem:[#allocation3 + $0x4c] ss:$12 sps:$4 sm:$0xff]  }
  0x29   :  { %148 = vmatpush1.bf16.msra.mxu0 %v1024_v3  ;;  %v1033_v9 = vld [vmem:[#allocation3 + $0x48] ss:$12 sps:$4 sm:$0xff]   ;;  %v62_v11 = vld [vmem:[%s1438_s0] sm:$0xf]  ;;  %vm143_vm0 = vcmask 523264   ;;  %vm1176_vm1 = vmmov 0  }
  0x2a   :  { %149 = vmatprep.subr.bf16.mxu0 %v1025_v4  ;;  %v1034_v10 = vld [vmem:[%s1441_s3 + $0x4] ss:$8 sps:$4 sm:$0xff]   ;;  %v1036_v12 = vld [vmem:[%s1441_s3] ss:$8 sps:$4 sm:$0xff]   ;;  %v1037_v13 = vld [vmem:[%s1441_s3 + $0x14] ss:$8 sps:$4 sm:$0xff]   ;;  %901 = vmatprep.mubr.msk.bf16.mxu1 %vm1176_vm1, %v1175_v1 }
  0x2b   :  { %v1039_v14 = vld [vmem:[%s1441_s3 + $0x10] ss:$8 sps:$4 sm:$0xff]   ;;  %v1040_v15 = vld [vmem:[%s1441_s3 + $0x24] ss:$8 sps:$4 sm:$0xff]   ;;  %v1042_v16 = vld [vmem:[%s1441_s3 + $0x20] ss:$8 sps:$4 sm:$0xff]  }
  0x2c   :  { %v1043_v17 = vld [vmem:[%s1441_s3 + $0x34] ss:$8 sps:$4 sm:$0xff]   ;;  %v1045_v18 = vld [vmem:[%s1441_s3 + $0x30] ss:$8 sps:$4 sm:$0xff]   ;;  %v1046_v19 = vld [vmem:[%s1441_s3 + $0x44] ss:$8 sps:$4 sm:$0xff]  }
  0x2d   :  { %150 = vmatpush1.bf16.msra.mxu0 %v1027_v5  ;;  %v1048_v20 = vld [vmem:[%s1441_s3 + $0x40] ss:$8 sps:$4 sm:$0xff]   ;;  %v1049_v21 = vld [vmem:[%s1441_s3 + $0x54] ss:$8 sps:$4 sm:$0xff]   ;;  %v1051_v22 = vld [vmem:[%s1441_s3 + $0x50] ss:$8 sps:$4 sm:$0xff]  }
  0x2e   :  { %151 = vmatprep.subr.bf16.mxu0 %v1028_v6  ;;  %v1052_v23 = vld [vmem:[%s1441_s3 + $0x64] ss:$8 sps:$4 sm:$0xff]   ;;  %v1054_v24 = vld [vmem:[%s1441_s3 + $0x60] ss:$8 sps:$4 sm:$0xff]   ;;  %v1055_v25 = vld [vmem:[%s1441_s3 + $0x74] ss:$8 sps:$4 sm:$0xff]  }
  0x2f   :  { %v1057_v26 = vld [vmem:[%s1441_s3 + $0x70] ss:$8 sps:$4 sm:$0xff]   ;;  %v1305_v27 = vld [vmem:[%s1439_s1] sm:$0xff]  ;;  %v1060_v30 = vld [vmem:[#allocation3 + $0x38] ss:$12 sps:$4 sm:$0xff]   ;;  %v1177_v32 = vmov 0.0|0.0  }
  0x30   :  { %v1058_v28 = vld [vmem:[#allocation3 + $0x8] ss:$12 sps:$4 sm:$0xff]   ;;  %v1059_v29 = vld [vmem:[#allocation3 + $0x20] ss:$12 sps:$4 sm:$0xff]   ;;  %v1061_v31 = vld [vmem:[#allocation3 + $0x50] ss:$12 sps:$4 sm:$0xff]  }
  0x31   :  { %152 = vmatpush1.bf16.msra.mxu0 %v1030_v7  ;;  %894 = vmatpush3.bf16.msra.mxu1 %v1058_v28  ;;  %v833_v33 = vld [vmem:[#allocation5] sm:$0xff]   ;;  %v864_v34 = vld [vmem:[#allocation5 + $0x8] sm:$0xff]   ;;  %v865_v35 = vld [vmem:[#allocation5 + $0x10] sm:$0xff]  }
  0x32   :  { %153 = vmatprep.subr.bf16.mxu0 %v1031_v8  ;;  %895 = vmatprep.subr.bf16.mxu1 %v1175_v1  ;;  %v866_v36 = vld [vmem:[#allocation5 + $0x18] sm:$0xff]   ;;  %v867_v37 = vld [vmem:[#allocation5 + $0x20] sm:$0xff]   ;;  %v868_v38 = vld [vmem:[#allocation5 + $0x28] sm:$0xff]  }
  0x33   :  { %v869_v39 = vld [vmem:[#allocation5 + $0x30] sm:$0xff]   ;;  %v870_v40 = vld [vmem:[#allocation5 + $0x38] sm:$0xff]  }
  0x34   :  { %v1062_v41 = vld [vmem:[%s1443_s5] ss:$16 sps:$4 sm:$0xff]   ;;  %v1064_v42 = vld [vmem:[%s1443_s5 + $0x4] ss:$16 sps:$4 sm:$0xff]   ;;  %v1067_v43 = vld [vmem:[%s1443_s5 + $0xc] ss:$16 sps:$4 sm:$0xff]  }
  0x35   :  { %154 = vmatpush1.bf16.msra.mxu0 %v1033_v9  ;;  %896 = vmatpush3.bf16.msra.mxu1 %v1059_v29  ;;  %v1065_v56 = vld [vmem:[%s1443_s5 + $0x8] ss:$16 sps:$4 sm:$0xff]   ;;  %v1070_v62 = vld [vmem:[%s1443_s5 + $0x24] ss:$16 sps:$4 sm:$0xff]   ;;  %v1073_v63 = vld [vmem:[%s1443_s5 + $0x2c] ss:$16 sps:$4 sm:$0xff]  }
  0x36   :  { %941 = vmatprep.subr.bf16.mxu0 %v1034_v10  ;;  %897 = vmatprep.subr.bf16.mxu1 %v1175_v1  ;;  %v1076_v2 = vld [vmem:[%s1443_s5 + $0x44] ss:$16 sps:$4 sm:$0xff]   ;;  %v1079_v3 = vld [vmem:[%s1443_s5 + $0x4c] ss:$16 sps:$4 sm:$0xff]   ;;  %v1074_v4 = vld [vmem:[%s1443_s5 + $0x40] ss:$16 sps:$4 sm:$0xff]  }
  0x37   :  { %v1077_v5 = vld [vmem:[%s1443_s5 + $0x48] ss:$16 sps:$4 sm:$0xff]   ;;  %v1082_v6 = vld [vmem:[%s1443_s5 + $0x64] ss:$16 sps:$4 sm:$0xff]   ;;  %v1085_v7 = vld [vmem:[%s1443_s5 + $0x6c] ss:$16 sps:$4 sm:$0xff]  }
  0x38   :  { %796 = vmatmul.mubr.msk.bf16.vlgmr.msra.gmra.mrb[0].mxu0 %vm143_vm0, %v62_v11  ;;  %v1080_v8 = vld [vmem:[%s1443_s5 + $0x60] ss:$16 sps:$4 sm:$0xff]   ;;  %v1083_v9 = vld [vmem:[%s1443_s5 + $0x68] ss:$16 sps:$4 sm:$0xff]   ;;  %v1088_v10 = vld [vmem:[%s1443_s5 + $0x84] ss:$16 sps:$4 sm:$0xff]  }
  0x39   :  { %943 = vmatpush1.bf16.msra.mxu0 %v1036_v12  ;;  %340 = vmatprep.mubr.f32.mxu0 %v1175_v1  ;;  %v1086_v12 = vld [vmem:[%s1443_s5 + $0x80] ss:$16 sps:$4 sm:$0xff]  }
  0x3a   :  { %945 = vmatprep.subr.bf16.mxu0 %v1037_v13  ;;  %898 = vmatpush3.bf16.msra.mxu1 %v1060_v30  ;;  %v1089_v13 = vld [vmem:[%s1443_s5 + $0x88] ss:$16 sps:$4 sm:$0xff]  }
  0x3b   :  { %899 = vmatprep.subr.bf16.mxu1 %v1175_v1 }
  0x3d   :  { %947 = vmatpush1.bf16.msra.mxu0 %v1039_v14  ;;  %v1094_v14 = vld [vmem:[%s1443_s5 + $0xa4] ss:$16 sps:$4 sm:$0xff]  }
  0x3e   :  { %949 = vmatprep.subr.bf16.mxu0 %v1040_v15  ;;  %900 = vmatpush3.bf16.msra.mxu1 %v1061_v31  ;;  %v1097_v15 = vld [vmem:[%s1443_s5 + $0xac] ss:$16 sps:$4 sm:$0xff]  }
  0x3f   :  { %972 = vmatprep.subr.bf16.mxu1 %v1177_v32 }
  0x41   :  { %951 = vmatpush1.bf16.msra.mxu0 %v1042_v16  ;;  %902 = vmatmul.mubr.msk.bf16.vlgmr.msra.gmra.mrb[0].mxu1 %vm143_vm0, %v62_v11  ;;  %v1091_v11 = vld [vmem:[%s1443_s5 + $0x8c] ss:$16 sps:$4 sm:$0xff]   ;;  %v1092_v16 = vld [vmem:[%s1443_s5 + $0xa0] ss:$16 sps:$4 sm:$0xff]  }
  0x42   :  { %953 = vmatprep.subr.bf16.mxu0 %v1043_v17  ;;  %937 = vmatprep.mubr.msk.f32.mxu1 %vm1176_vm1, %v1175_v1  ;;  %v1068_v1 = vld [vmem:[%s1443_s5 + $0x20] ss:$16 sps:$4 sm:$0xff]   ;;  %v1095_v17 = vld [vmem:[%s1443_s5 + $0xa8] ss:$16 sps:$4 sm:$0xff]  }
  0x43   :  { %974 = vmatpush3.bf16.msra.mxu1 %v833_v33 }
  0x44   :  { %975 = vmatprep.subr.bf16.mxu1 %v1177_v32 }
  0x45   :  { %955 = vmatpush1.bf16.msra.mxu0 %v1045_v18  ;;  %v1100_v18 = vld [vmem:[%s1443_s5 + $0xc4] ss:$16 sps:$4 sm:$0xff]  }
  0x46   :  { %957 = vmatprep.subr.bf16.mxu0 %v1046_v19  ;;  %v1103_v19 = vld [vmem:[%s1443_s5 + $0xcc] ss:$16 sps:$4 sm:$0xff]  }
  0x47   :  { %977 = vmatpush3.bf16.msra.mxu1 %v864_v34 }
  0x48   :  { %978 = vmatprep.subr.bf16.mxu1 %v1177_v32 }
  0x49   :  { %959 = vmatpush1.bf16.msra.mxu0 %v1048_v20  ;;  %v1098_v20 = vld [vmem:[%s1443_s5 + $0xc0] ss:$16 sps:$4 sm:$0xff]  }
  0x4a   :  { %961 = vmatprep.subr.bf16.mxu0 %v1049_v21  ;;  %v1101_v21 = vld [vmem:[%s1443_s5 + $0xc8] ss:$16 sps:$4 sm:$0xff]  }
  0x4b   :  { %980 = vmatpush3.bf16.msra.mxu1 %v865_v35 }
  0x4c   :  { %981 = vmatprep.subr.bf16.mxu1 %v1177_v32 }
  0x4d   :  { %963 = vmatpush1.bf16.msra.mxu0 %v1051_v22  ;;  %v1106_v22 = vld [vmem:[%s1443_s5 + $0xe4] ss:$16 sps:$4 sm:$0xff]  }
  0x4e   :  { %965 = vmatprep.subr.bf16.mxu0 %v1052_v23  ;;  %v1104_v23 = vld [vmem:[%s1443_s5 + $0xe0] ss:$16 sps:$4 sm:$0xff]  }
  0x4f   :  { %983 = vmatpush3.bf16.msra.mxu1 %v866_v36 }
  0x50   :  { %984 = vmatprep.subr.bf16.mxu1 %v1177_v32 }
  0x51   :  { %967 = vmatpush1.bf16.msra.mxu0 %v1054_v24  ;;  %v1107_v24 = vld [vmem:[%s1443_s5 + $0xe8] ss:$16 sps:$4 sm:$0xff]  }
  0x52   :  { %969 = vmatprep.subr.bf16.mxu0 %v1055_v25  ;;  %v1109_v25 = vld [vmem:[%s1443_s5 + $0xec] ss:$16 sps:$4 sm:$0xff]  }
  0x53   :  { %986 = vmatpush3.bf16.msra.mxu1 %v867_v37 }
  0x54   :  { %987 = vmatprep.subr.bf16.mxu1 %v1177_v32 }
  0x55   :  { %971 = vmatpush1.bf16.msra.mxu0 %v1057_v26 }
  0x56   :  { %688 = vmatprep.subr.bf16.mxu0 %v1064_v42 }
  0x57   :  { %989 = vmatpush3.bf16.msra.mxu1 %v868_v38 }
  0x58   :  { %341 = vmatmul.mubr.f32.vlgmr.msra.gmra.mrb[4].mxu0 %v1305_v27  ;;  %990 = vmatprep.subr.bf16.mxu1 %v1177_v32 }
  0x59   :  { %720 = vmatprep.mubr.bf16.mxu0 %v1174_v0  ;;  %689 = vmatpush1.bf16.msra.mxu0 %v1062_v41  ;;  %v508_v41 = vlaneseq }
  0x5a   :  { %690 = vmatprep.subr.bf16.mxu0 %v1070_v62 }
  0x5b   :  { %992 = vmatpush3.bf16.msra.mxu1 %v869_v39  ;;  %v509_v42 = vshrl.u32 %v508_v41, 7 }
  0x5c   :  { %993 = vmatprep.subr.bf16.mxu1 %v1177_v32 }
  0x5d   :  { %691 = vmatpush1.bf16.msra.mxu0 %v1068_v1 }
  0x5e   :  { %692 = vmatprep.subr.bf16.mxu0 %v1076_v2 }
  0x5f   :  { %995 = vmatpush3.bf16.msra.mxu1 %v870_v40 }
  0x60   :  { %729 = vmatprep.subr.bf16.mxu1 %v1067_v43  ;;  %v510_v43 = vsub.s32 0, %v509_v42 }
  0x61   :  { %693 = vmatpush1.bf16.msra.mxu0 %v1074_v4 }
  0x62   :  { %694 = vmatprep.subr.bf16.mxu0 %v1082_v6 }
  0x65   :  { %695 = vmatpush1.bf16.msra.mxu0 %v1080_v8 }
  0x66   :  { %696 = vmatprep.subr.bf16.mxu0 %v1088_v10 }
  0x69   :  { %697 = vmatpush1.bf16.msra.mxu0 %v1086_v12 }
  0x6a   :  { %698 = vmatprep.subr.bf16.mxu0 %v1094_v14 }
  0x6d   :  { %699 = vmatpush1.bf16.msra.mxu0 %v1092_v16 }
  0x6e   :  { %700 = vmatprep.subr.bf16.mxu0 %v1100_v18 }
  0x71   :  { %701 = vmatpush1.bf16.msra.mxu0 %v1098_v20 }
  0x72   :  { %702 = vmatprep.subr.bf16.mxu0 %v1106_v22 }
  0x75   :  { %703 = vmatpush1.bf16.msra.mxu0 %v1104_v23 }
 0x10b   :  { %v181_v44 = vpop.f32.mrb[0].mxu0 }
 0x10c   :  { %v183_v45 = vpop.f32.mrb[1].mxu0 }
 0x10d   :  { %v185_v46 = vpop.f32.mrb[2].mxu0 }
 0x10e   :  { %v186_v47 = vpop.f32.mrb[3].mxu0  ;;  %v522_v46 = vsub.s32 3, %v509_v42 }
 0x114   :  { %v1331_v58 = vpop.f32.mrb[0].mxu1 }
 0x115   :  { %v903_v59 = vpop.f32.mrb[1].mxu1 }
 0x116   :  { %v225_v60 = vpop.f32.mrb[2].mxu1 }
 0x117   :  { %v904_v61 = vpop.f32.mrb[3].mxu1 }
 0x12b   :  { %v342_v48 = vpop.f32.mrb[4].mxu0 }
 0x12c   :  { %v1324_v49 = vadd.f32 %v342_v48, %v181_v44  ;;  %v344_v50 = vpop.f32.mrb[5].mxu0  ;;  %v518_v44 = vsub.s32 2, %v509_v42 }
 0x12d   :  { %v354_v51 = vadd.f32 %v344_v50, %v183_v45  ;;  %v506_v45 = vld [vmem:[%s1444_s6] sm:$0xf] }
 0x12e   :  { %v798_v26 = vmul.f32 -1.442695, %v1324_v49  ;;  %v511_v47 = vrot.slane %v506_v45, %v510_v43  ;;  %v519_v48 = vrot.slane %v506_v45, %v518_v44  ;;  %v523_v50 = vrot.slane %v506_v45, %v522_v46 }
 0x12f   :  { %v799_v52 = vmul.f32 -1.442695, %v354_v51 }
 0x131   :  { %1110 = vpow2.f32 %v799_v52 }
 0x13b   :  { %v1111_v53 = vpop.eup %1110 }
 0x13c   :  { %v358_v54 = vadd.f32 1.0, %v1111_v53 }
 0x13e   :  { %1112 = vrcp.f32 %v358_v54 }
 0x13f   :  { %1114 = vpow2.f32 %v798_v26 }
 0x148   :  { %v1113_v55 = vpop.eup %1112 }
 0x149   :  { %v361_v57 = vmul.f32 %v1113_v55, %v1305_v27  ;;  %v1115_v28 = vpop.eup %1114 }
 0x14a   :  { %v351_v29 = vadd.f32 1.0, %v1115_v28 }
 0x14b   :  { %938 = vmatmul.mubr.f32.vlgmr.msra.gmra.mrb[4].mxu1 %v361_v57 }
 0x14c   :  { %730 = vmatpush1.bf16.msra.mxu1 %v1065_v56  ;;  %761 = vmatprep.mubr.bf16.mxu1 %v1174_v0  ;;  %v1071_v0 = vld [vmem:[%s1443_s5 + $0x28] ss:$16 sps:$4 sm:$0xff]   ;;  %1116 = vrcp.f32 %v351_v29 }
 0x14d   :  { %731 = vmatprep.subr.bf16.mxu1 %v1073_v63 }
 0x150   :  { %732 = vmatpush1.bf16.msra.mxu1 %v1071_v0 }
 0x151   :  { %733 = vmatprep.subr.bf16.mxu1 %v1079_v3 }
 0x154   :  { %734 = vmatpush1.bf16.msra.mxu1 %v1077_v5 }
 0x155   :  { %735 = vmatprep.subr.bf16.mxu1 %v1085_v7 }
 0x156   :  { %v1117_v33 = vpop.eup %1116 }
 0x157   :  { %v467_v34 = vsub.f32 1.0, %v1117_v33  ;;  %v466_v36 = vmul.f32 %v1117_v33, %v1305_v27  ;;  %v514_v27 = vsub.s32 1, %v509_v42 }
 0x158   :  { %736 = vmatpush1.bf16.msra.mxu1 %v1083_v9 }
 0x159   :  { %737 = vmatprep.subr.bf16.mxu1 %v1091_v11  ;;  %v515_v49 = vrot.slane %v506_v45, %v514_v27 }
 0x15c   :  { %738 = vmatpush1.bf16.msra.mxu1 %v1089_v13 }
 0x15d   :  { %739 = vmatprep.subr.bf16.mxu1 %v1097_v15 }
 0x160   :  { %740 = vmatpush1.bf16.msra.mxu1 %v1095_v17 }
 0x161   :  { %741 = vmatprep.subr.bf16.mxu1 %v1103_v19 }
 0x164   :  { %742 = vmatpush1.bf16.msra.mxu1 %v1101_v21 }
 0x165   :  { %743 = vmatprep.subr.bf16.mxu1 %v1109_v25 }
 0x168   :  { %744 = vmatpush1.bf16.msra.mxu1 %v1107_v24 }
 0x21e   :  { %v460_v30 = vpop.f32.mrb[4].mxu1 }
 0x21f   :  { %v464_v31 = vadd.f32 %v460_v30, %v1331_v58  ;;  %v939_v32 = vpop.f32.mrb[5].mxu1 }
 0x221   :  { %1118 = vtanh.f32 %v464_v31 }
 0x22b   :  { %v1119_v35 = vpop.eup %1118 }
 0x22c   :  { %v468_v37 = vmul.f32 %v1119_v35, %v467_v34 }
 0x22e   :  { %v469_v38 = vadd.f32 %v468_v37, %v466_v36 }
 0x230   :  { %470 = vst [vmem:[%s1446_s8] sm:$0xff] %v469_v38  ;;  %v471_v39 = vpack.c.bf16 %v469_v38, %v469_v38 }
 0x232   :  { %472 = vst [vmem:[#allocation2] sm:$0xf] %v471_v39 }
 0x239   :  { %v473_v40 = vld [vmem:[#allocation2] sm:$0xf] }
 0x23a   :  { %721 = vmatmul.mubr.bf16.vlgmr.msra.gmra.mrb[8].mxu0 %v473_v40  ;;  %762 = vmatmul.mubr.bf16.vlgmr.msra.gmra.mrb[8].mxu1 %v473_v40 }
 0x30d   :  { %v722_v51 = vpop.f32.mrb[8].mxu0  ;;  %v763_v52 = vpop.f32.mrb[8].mxu1 }
 0x30e   :  { %v723_v53 = vadd.f32 %v722_v51, %v511_v47  ;;  %v764_v54 = vadd.f32 %v763_v52, %v519_v48  ;;  %v724_v55 = vpop.f32.mrb[9].mxu0  ;;  %v765_v56 = vpop.f32.mrb[9].mxu1 }
 0x30f   :  { %v725_v57 = vadd.f32 %v724_v55, %v515_v49  ;;  %v766_v58 = vadd.f32 %v765_v56, %v523_v50  ;;  %v726_v59 = vpop.f32.mrb[10].mxu0  ;;  %v767_v60 = vpop.f32.mrb[10].mxu1 }
 0x310   :  { %770 = vst [vmem:[%s1445_s7] sm:$0xff] %v723_v53  ;;  %772 = vst [vmem:[%s1445_s7 + $0x10] sm:$0xff] %v764_v54  ;;  %v727_v61 = vpop.f32.mrb[11].mxu0  ;;  %v768_v62 = vpop.f32.mrb[11].mxu1 }
 0x311   :  { %771 = vst [vmem:[%s1445_s7 + $0x8] sm:$0xff] %v725_v57  ;;  %773 = vst [vmem:[%s1445_s7 + $0x18] sm:$0xff] %v766_v58 }
 0x312   :  { %782 = vsyncpa [#allocation4], 1 }
 0x313   :  { %783 = vsyncpa [#allocation6], 1 }

</bundles_post_ra>
